<compile_context>
chip_gen: v6e
topology: v6e:2x2x1
jax: 0.10.0
libtpu: 0.0.40
codegen_flags: <defaults>
</compile_context>

<pallas_src>
import functools

import jax
import jax.numpy as jnp
from jax.experimental import pallas as pl
from jax.experimental.pallas import tpu as pltpu


def _round_up(x, m):
    return (x + m - 1) // m * m


def _mlp_kernel(x_ref, w1_ref, b1_ref, w2_ref, b2_ref,
                w3_ref, b3_ref, w4_ref, b4_ref, o_ref):
    """Entire 4-layer MLP fused for one batch tile; dots on MXU, f32 accum."""
    cd = w1_ref.dtype  # compute dtype for MXU inputs (f32 or bf16)
    x = x_ref[...].astype(cd)
    h = jnp.dot(x, w1_ref[...], preferred_element_type=jnp.float32) + b1_ref[...]
    h = jnp.maximum(h, 0.0)
    h = jnp.dot(h.astype(cd), w2_ref[...],
                preferred_element_type=jnp.float32) + b2_ref[...]
    h = jnp.maximum(h, 0.0)
    h = jnp.dot(h.astype(cd), w3_ref[...],
                preferred_element_type=jnp.float32) + b3_ref[...]
    h = jnp.maximum(h, 0.0)
    y = jnp.dot(h.astype(cd), w4_ref[...],
                preferred_element_type=jnp.float32) + b4_ref[...]
    o_ref[...] = jnp.tanh(y).astype(o_ref.dtype)


def _choose_tiling(batch, tile_b):
    """Pick (tile, steps): big tile, 8-aligned, even step count when > 1."""
    tile_b = max(8, int(tile_b))
    steps = max(1, -(-batch // tile_b))          # ceil-div
    # Split a single big step so both v7x TensorCores get work.
    if steps == 1 and batch >= 1024:
        steps = 2
    # Keep the step count even for v7x megacore load balance.
    if steps > 1 and steps % 2 == 1:
        steps += 1
    tile = _round_up(max(1, -(-batch // steps)), 8)
    return tile, steps


@functools.partial(jax.jit, static_argnames=("tile_b", "use_bf16"))
def rnn_net_nostate_forward(train_state_data, train_input_data, params, *,
                            tile_b=2048, use_bf16=True):
    # train_state_data is accepted for API parity but unused, exactly like the
    # PyTorch forward (state_net is never called).
    del train_state_data
    B, in_dim = train_input_data.shape
    w1, b1, w2, b2, w3, b3, w4, b4 = params
    h1, h2, h3 = w1.shape[1], w2.shape[1], w3.shape[1]
    out_dim = w4.shape[1]

    # --- padded (TPU-friendly) feature dims ---------------------------------
    w_dtype = jnp.bfloat16 if use_bf16 else jnp.float32
    in_p = _round_up(in_dim, 16 if use_bf16 else 8)   # contraction alignment
    h1_p = _round_up(h1, 128)                         # lane-full hidden dims
    h2_p = _round_up(h2, 128)
    h3_p = _round_up(h3, 128)
    out_p = _round_up(out_dim, 8)                     # small output: 8 lanes

    def pad_w(w, rows, cols):
        return (jnp.zeros((rows, cols), w_dtype)
                .at[:w.shape[0], :w.shape[1]].set(w.astype(w_dtype)))

    def pad_b(b, cols):
        return (jnp.zeros((1, cols), jnp.float32)
                .at[:, :b.shape[1]].set(b.astype(jnp.float32)))

    w1p, b1p = pad_w(w1, in_p, h1_p), pad_b(b1, h1_p)
    w2p, b2p = pad_w(w2, h1_p, h2_p), pad_b(b2, h2_p)
    w3p, b3p = pad_w(w3, h2_p, h3_p), pad_b(b3, h3_p)
    w4p, b4p = pad_w(w4, h3_p, out_p), pad_b(b4, out_p)

    # --- batch tiling (pad batch so any B works; even step count) -----------
    tile, steps = _choose_tiling(B, tile_b)
    b_pad = tile * steps
    # x is materialized once in the compute dtype (bf16 halves its HBM bytes).
    x_p = (jnp.zeros((b_pad, in_p), w_dtype)
           .at[:B, :in_dim].set(train_input_data.astype(w_dtype)))

    # Weights/biases: fully VMEM-resident, untiled (no per-step pipelining).
    resident = pl.BlockSpec(memory_space=pltpu.MemorySpace.VMEM)

    out_padded = pl.pallas_call(
        _mlp_kernel,
        out_shape=jax.ShapeDtypeStruct((b_pad, out_p), jnp.float32),
        grid_spec=pltpu.PrefetchScalarGridSpec(
            num_scalar_prefetch=0,
            grid=(steps,),
            in_specs=[
                pl.BlockSpec((tile, in_p), lambda i: (i, 0)),   # x batch tile
                resident, resident,   # w1, b1
                resident, resident,   # w2, b2
                resident, resident,   # w3, b3
                resident, resident,   # w4, b4
            ],
            out_specs=pl.BlockSpec((tile, out_p), lambda i: (i, 0)),
        ),
        compiler_params=pltpu.CompilerParams(
            dimension_semantics=("parallel",),
            vmem_limit_bytes=32 * 1024 * 1024,
        ),
    )(x_p, w1p, b1p, w2p, b2p, w3p, b3p, w4p, b4p)

    return out_padded[:B, :out_dim]


def init_params(key, state_dim=3, input_dim=3, out_dim=3):
    """Deterministic init mimicking nn.Linear default (U[-1/sqrt(fan_in), +])."""
    def linear(k, fan_in, fan_out):
        kw, kb = jax.random.split(k)
        bound = 1.0 / jnp.sqrt(fan_in)
        # Stored as (in, out): transpose of PyTorch's (out, in) weight.
        w = jax.random.uniform(kw, (fan_in, fan_out), jnp.float32, -bound, bound)
        b = jax.random.uniform(kb, (1, fan_out), jnp.float32, -bound, bound)
        return w, b

    k_state, k_in, k1, k2, k3 = jax.random.split(key, 5)
    # state_net params exist in __init__ but are unused in forward; they would
    # be dead kernel inputs, so they are not materialized here.
    del k_state, state_dim
    w1, b1 = linear(k_in, input_dim, 64)
    w2, b2 = linear(k1, 64, 128)
    w3, b3 = linear(k2, 128, 64)
    w4, b4 = linear(k3, 64, out_dim)
    return (w1, b1, w2, b2, w3, b3, w4, b4)


def _reference(x, params):
    w1, b1, w2, b2, w3, b3, w4, b4 = params
    h = jax.nn.relu(x @ w1 + b1)
    h = jax.nn.relu(h @ w2 + b2)
    h = jax.nn.relu(h @ w3 + b3)
    return jnp.tanh(h @ w4 + b4)


if __name__ == "__main__":
    key = jax.random.PRNGKey(0)
    k_params, k_state, k_input = jax.random.split(key, 3)

    B, state_dim, input_dim, out_dim = 8, 3, 3, 3
    params = init_params(k_params, state_dim, input_dim, out_dim)

    train_state_data = jax.random.normal(k_state, (B, state_dim), jnp.float32)
    train_input_data = jax.random.normal(k_input, (B, input_dim), jnp.float32)

    # Small demo batch, exact f32 path -> tight reference check.
    out = rnn_net_nostate_forward(train_state_data, train_input_data, params,
                                  use_bf16=False)
    out = jax.block_until_ready(out)
    ref = _reference(train_input_data, params)
    assert out.shape == (B, out_dim)
    assert jnp.allclose(out, ref, atol=1e-5, rtol=1e-5), "mismatch vs reference"

    # Default (bf16 MXU inputs, f32 accumulation) path, two grid steps.
    B2 = 1024
    x2 = jax.random.normal(jax.random.PRNGKey(1), (B2, input_dim), jnp.float32)
    s2 = jnp.zeros((B2, state_dim), jnp.float32)
    out2 = jax.block_until_ready(rnn_net_nostate_forward(s2, x2, params))
    ref2 = _reference(x2, params)
    assert out2.shape == (B2, out_dim)
    assert jnp.allclose(out2, ref2, atol=3e-2), "mismatch (bf16, large batch)"

    # Uneven batch exercises batch padding + even-step-count grid (3 -> 4).
    B3 = 4100
    x3 = jax.random.normal(jax.random.PRNGKey(2), (B3, input_dim), jnp.float32)
    s3 = jnp.zeros((B3, state_dim), jnp.float32)
    out3 = jax.block_until_ready(rnn_net_nostate_forward(s3, x3, params))
    ref3 = _reference(x3, params)
    assert out3.shape == (B3, out_dim)
    assert jnp.allclose(out3, ref3, atol=3e-2), "mismatch (bf16, uneven batch)"

    print("KERNEL_OK")
</pallas_src>

<mosaic_0001>
module attributes {stable_mosaic.version = 11 : i64} {
  func.func @_mlp_kernel(%arg0: i32, %arg1: memref<8x8xf32, #tpu.memory_space<vmem>>, %arg2: memref<8x128xf32, #tpu.memory_space<vmem>>, %arg3: memref<1x128xf32, #tpu.memory_space<vmem>>, %arg4: memref<128x128xf32, #tpu.memory_space<vmem>>, %arg5: memref<1x128xf32, #tpu.memory_space<vmem>>, %arg6: memref<128x128xf32, #tpu.memory_space<vmem>>, %arg7: memref<1x128xf32, #tpu.memory_space<vmem>>, %arg8: memref<128x8xf32, #tpu.memory_space<vmem>>, %arg9: memref<1x8xf32, #tpu.memory_space<vmem>>, %arg10: memref<8x8xf32, #tpu.memory_space<vmem>>) attributes {dimension_semantics = [#tpu.dimension_semantics<parallel>], iteration_bounds = array<i64: 1>, scalar_prefetch = 0 : i64, scratch_operands = 0 : i64, tpu.core_type = #tpu.core_type<tc>, window_params = [{transform_indices = @transform_0, window_bounds = array<i64: 8, 8>}, {pipeline_mode = #tpu.pipeline_mode<synchronous>, transform_indices = @transform_1, window_bounds = array<i64: 8, 128>}, {pipeline_mode = #tpu.pipeline_mode<synchronous>, transform_indices = @transform_2, window_bounds = array<i64: 1, 128>}, {pipeline_mode = #tpu.pipeline_mode<synchronous>, transform_indices = @transform_3, window_bounds = array<i64: 128, 128>}, {pipeline_mode = #tpu.pipeline_mode<synchronous>, transform_indices = @transform_4, window_bounds = array<i64: 1, 128>}, {pipeline_mode = #tpu.pipeline_mode<synchronous>, transform_indices = @transform_5, window_bounds = array<i64: 128, 128>}, {pipeline_mode = #tpu.pipeline_mode<synchronous>, transform_indices = @transform_6, window_bounds = array<i64: 1, 128>}, {pipeline_mode = #tpu.pipeline_mode<synchronous>, transform_indices = @transform_7, window_bounds = array<i64: 128, 8>}, {pipeline_mode = #tpu.pipeline_mode<synchronous>, transform_indices = @transform_8, window_bounds = array<i64: 1, 8>}, {transform_indices = @transform_9, window_bounds = array<i64: 8, 8>}]} {
    %c0 = arith.constant 0 : index
    %c0_0 = arith.constant 0 : index
    %0 = vector.load %arg1[%c0, %c0_0] : memref<8x8xf32, #tpu.memory_space<vmem>>, vector<8x8xf32>
    %c0_1 = arith.constant 0 : index
    %c0_2 = arith.constant 0 : index
    %1 = vector.load %arg2[%c0_1, %c0_2] : memref<8x128xf32, #tpu.memory_space<vmem>>, vector<8x128xf32>
    %cst = arith.constant dense<0.000000e+00> : vector<8x128xf32>
    %2 = tpu.matmul %0, %1, %cst {dimension_numbers = #tpu.dot_dimension_numbers<[1], [0], [0], [1], [0, 0, 1, 1], [], []>} : vector<8x8xf32>, vector<8x128xf32>, vector<8x128xf32> -> vector<8x128xf32>
    %c0_3 = arith.constant 0 : index
    %c0_4 = arith.constant 0 : index
    %3 = vector.load %arg3[%c0_3, %c0_4] : memref<1x128xf32, #tpu.memory_space<vmem>>, vector<1x128xf32>
    %4 = vector.broadcast %3 : vector<1x128xf32> to vector<8x128xf32>
    %5 = arith.addf %2, %4 : vector<8x128xf32>
    %cst_5 = arith.constant 0.000000e+00 : f32
    %6 = vector.broadcast %cst_5 : f32 to vector<8x128xf32>
    %7 = arith.maximumf %5, %6 : vector<8x128xf32>
    %c0_6 = arith.constant 0 : index
    %c0_7 = arith.constant 0 : index
    %8 = vector.load %arg4[%c0_6, %c0_7] : memref<128x128xf32, #tpu.memory_space<vmem>>, vector<128x128xf32>
    %cst_8 = arith.constant dense<0.000000e+00> : vector<8x128xf32>
    %9 = tpu.matmul %7, %8, %cst_8 {dimension_numbers = #tpu.dot_dimension_numbers<[1], [0], [0], [1], [0, 0, 1, 1], [], []>} : vector<8x128xf32>, vector<128x128xf32>, vector<8x128xf32> -> vector<8x128xf32>
    %c0_9 = arith.constant 0 : index
    %c0_10 = arith.constant 0 : index
    %10 = vector.load %arg5[%c0_9, %c0_10] : memref<1x128xf32, #tpu.memory_space<vmem>>, vector<1x128xf32>
    %11 = vector.broadcast %10 : vector<1x128xf32> to vector<8x128xf32>
    %12 = arith.addf %9, %11 : vector<8x128xf32>
    %cst_11 = arith.constant 0.000000e+00 : f32
    %13 = vector.broadcast %cst_11 : f32 to vector<8x128xf32>
    %14 = arith.maximumf %12, %13 : vector<8x128xf32>
    %c0_12 = arith.constant 0 : index
    %c0_13 = arith.constant 0 : index
    %15 = vector.load %arg6[%c0_12, %c0_13] : memref<128x128xf32, #tpu.memory_space<vmem>>, vector<128x128xf32>
    %cst_14 = arith.constant dense<0.000000e+00> : vector<8x128xf32>
    %16 = tpu.matmul %14, %15, %cst_14 {dimension_numbers = #tpu.dot_dimension_numbers<[1], [0], [0], [1], [0, 0, 1, 1], [], []>} : vector<8x128xf32>, vector<128x128xf32>, vector<8x128xf32> -> vector<8x128xf32>
    %c0_15 = arith.constant 0 : index
    %c0_16 = arith.constant 0 : index
    %17 = vector.load %arg7[%c0_15, %c0_16] : memref<1x128xf32, #tpu.memory_space<vmem>>, vector<1x128xf32>
    %18 = vector.broadcast %17 : vector<1x128xf32> to vector<8x128xf32>
    %19 = arith.addf %16, %18 : vector<8x128xf32>
    %cst_17 = arith.constant 0.000000e+00 : f32
    %20 = vector.broadcast %cst_17 : f32 to vector<8x128xf32>
    %21 = arith.maximumf %19, %20 : vector<8x128xf32>
    %c0_18 = arith.constant 0 : index
    %c0_19 = arith.constant 0 : index
    %22 = vector.load %arg8[%c0_18, %c0_19] : memref<128x8xf32, #tpu.memory_space<vmem>>, vector<128x8xf32>
    %cst_20 = arith.constant dense<0.000000e+00> : vector<8x8xf32>
    %23 = tpu.matmul %21, %22, %cst_20 {dimension_numbers = #tpu.dot_dimension_numbers<[1], [0], [0], [1], [0, 0, 1, 1], [], []>} : vector<8x128xf32>, vector<128x8xf32>, vector<8x8xf32> -> vector<8x8xf32>
    %c0_21 = arith.constant 0 : index
    %c0_22 = arith.constant 0 : index
    %24 = vector.load %arg9[%c0_21, %c0_22] : memref<1x8xf32, #tpu.memory_space<vmem>>, vector<1x8xf32>
    %25 = vector.broadcast %24 : vector<1x8xf32> to vector<8x8xf32>
    %26 = arith.addf %23, %25 : vector<8x8xf32>
    %27 = math.tanh %26 : vector<8x8xf32>
    %c0_23 = arith.constant 0 : index
    %c0_24 = arith.constant 0 : index
    %28 = vector.load %arg10[%c0_23, %c0_24] : memref<8x8xf32, #tpu.memory_space<vmem>>, vector<8x8xf32>
    tpu.vector_store %arg10[%c0_23, %c0_24], %27 {strides = array<i32>} : memref<8x8xf32, #tpu.memory_space<vmem>>, vector<8x8xf32>,
    return
  }
  func.func @transform_0(%arg0: i32) -> (i32, i32) {
    %c0_i32 = arith.constant 0 : i32
    %c0_i32_0 = arith.constant 0 : i32
    return %arg0, %c0_i32 : i32, i32
  }
  func.func @transform_1(%arg0: i32) -> (i32, i32) {
    %c0_i32 = arith.constant 0 : i32
    %c0_i32_0 = arith.constant 0 : i32
    %c0_i32_1 = arith.constant 0 : i32
    return %c0_i32, %c0_i32_0 : i32, i32
  }
  func.func @transform_2(%arg0: i32) -> (i32, i32) {
    %c0_i32 = arith.constant 0 : i32
    %c0_i32_0 = arith.constant 0 : i32
    %c0_i32_1 = arith.constant 0 : i32
    return %c0_i32, %c0_i32_0 : i32, i32
  }
  func.func @transform_3(%arg0: i32) -> (i32, i32) {
    %c0_i32 = arith.constant 0 : i32
    %c0_i32_0 = arith.constant 0 : i32
    %c0_i32_1 = arith.constant 0 : i32
    return %c0_i32, %c0_i32_0 : i32, i32
  }
  func.func @transform_4(%arg0: i32) -> (i32, i32) {
    %c0_i32 = arith.constant 0 : i32
    %c0_i32_0 = arith.constant 0 : i32
    %c0_i32_1 = arith.constant 0 : i32
    return %c0_i32, %c0_i32_0 : i32, i32
  }
  func.func @transform_5(%arg0: i32) -> (i32, i32) {
    %c0_i32 = arith.constant 0 : i32
    %c0_i32_0 = arith.constant 0 : i32
    %c0_i32_1 = arith.constant 0 : i32
    return %c0_i32, %c0_i32_0 : i32, i32
  }
  func.func @transform_6(%arg0: i32) -> (i32, i32) {
    %c0_i32 = arith.constant 0 : i32
    %c0_i32_0 = arith.constant 0 : i32
    %c0_i32_1 = arith.constant 0 : i32
    return %c0_i32, %c0_i32_0 : i32, i32
  }
  func.func @transform_7(%arg0: i32) -> (i32, i32) {
    %c0_i32 = arith.constant 0 : i32
    %c0_i32_0 = arith.constant 0 : i32
    %c0_i32_1 = arith.constant 0 : i32
    return %c0_i32, %c0_i32_0 : i32, i32
  }
  func.func @transform_8(%arg0: i32) -> (i32, i32) {
    %c0_i32 = arith.constant 0 : i32
    %c0_i32_0 = arith.constant 0 : i32
    %c0_i32_1 = arith.constant 0 : i32
    return %c0_i32, %c0_i32_0 : i32, i32
  }
  func.func @transform_9(%arg0: i32) -> (i32, i32) {
    %c0_i32 = arith.constant 0 : i32
    %c0_i32_0 = arith.constant 0 : i32
    return %arg0, %c0_i32 : i32, i32
  }
}

</mosaic_0001>

<bundles_post_ra>
// kernel: rnn_net_nostate_forward.1
= control target key start
LH: loop header
LB: loop body
LE: loop exit
PB: predicated region body
PF: predicated region fallthrough
CT: control target
= control target key end

     0   :  { %vm41_vm0 = vcmask 64512   ;;  %v575_v0 = vmov 0.0   ;;  %vm576_vm1 = vmmov 0   ;;  %s851_s1 = inlined_call_operand.vmem [shape: f32[8,128], index: 1, kind: input, shape index: {}]   ;;  %s852_s0 = inlined_call_operand.vmem [shape: f32[8,8], index: 0, kind: input, shape index: {}]   ;;  %s853_s3 = inlined_call_operand.vmem [shape: f32[128,128], index: 3, kind: input, shape index: {}]   ;;  %s854_s5 = inlined_call_operand.vmem [shape: f32[128,128], index: 5, kind: input, shape index: {}]   ;;  %s855_s2 = inlined_call_operand.vmem [shape: f32[1,128], index: 2, kind: input, shape index: {}]   ;;  %s856_s7 = inlined_call_operand.vmem [shape: f32[128,8], index: 7, kind: input, shape index: {}]   ;;  %s857_s4 = inlined_call_operand.vmem [shape: f32[1,128], index: 4, kind: input, shape index: {}]   ;;  %s858_s6 = inlined_call_operand.vmem [shape: f32[1,128], index: 6, kind: input, shape index: {}]   ;;  %s859_s8 = inlined_call_operand.vmem [shape: f32[1,8], index: 8, kind: input, shape index: {}]   ;;  %s860_s9 = inlined_call_operand.vmem [shape: f32[8,8], index: 9, kind: output, shape index: {}]  }
   0x1   :  { %461 = vmatprep.subr.mxu0 %v575_v0  ;;  %v33_v1 = vld [vmem:[%s851_s1] sm:$0xff]  ;;  %463 = vmatprep.mubr.msk.f32.mxu0 %vm576_vm1, %v575_v0  ;;  %v131_v3 = vld [vmem:[%s853_s3 + $0x78] sm:$0xff]  ;;  %v130_v4 = vld [vmem:[%s853_s3 + $0x70] sm:$0xff] }
   0x2   :  { %v32_v2 = vld [vmem:[%s852_s0] sm:$0xff]  ;;  %462 = vmatpush3.msra.mxu0 %v33_v1  ;;  %466 = vmatprep.subr.mxu1 %v575_v0  ;;  %v129_v5 = vld [vmem:[%s853_s3 + $0x68] sm:$0xff]  ;;  %v127_v7 = vld [vmem:[%s853_s3 + $0x58] sm:$0xff] }
   0x3   :  { %464 = vmatmul.mubr.msk.f32.vlgmr.msra.gmra.mxu0 %vm41_vm0, %v32_v2  ;;  %467 = vmatpush3.msra.mxu1 %v131_v3  ;;  %v128_v6 = vld [vmem:[%s853_s3 + $0x60] sm:$0xff]  ;;  %v126_v8 = vld [vmem:[%s853_s3 + $0x50] sm:$0xff]  ;;  %v125_v9 = vld [vmem:[%s853_s3 + $0x48] sm:$0xff] }
   0x4   :  { %468 = vmatprep.subr.mxu1 %v575_v0  ;;  %498 = vmatprep.mubr.msk.f32.mxu1 %vm576_vm1, %v575_v0  ;;  %v124_v10 = vld [vmem:[%s853_s3 + $0x40] sm:$0xff]  ;;  %v123_v11 = vld [vmem:[%s853_s3 + $0x38] sm:$0xff]  ;;  %v122_v12 = vld [vmem:[%s853_s3 + $0x30] sm:$0xff] }
   0x5   :  { %469 = vmatpush3.msra.mxu1 %v130_v4  ;;  %501 = vmatprep.subr.mxu0 %v575_v0  ;;  %v121_v13 = vld [vmem:[%s853_s3 + $0x28] sm:$0xff]  ;;  %v120_v14 = vld [vmem:[%s853_s3 + $0x20] sm:$0xff]  ;;  %v119_v15 = vld [vmem:[%s853_s3 + $0x18] sm:$0xff] }
   0x6   :  { %470 = vmatprep.subr.mxu1 %v575_v0  ;;  %533 = vmatprep.mubr.msk.f32.mxu0 %vm576_vm1, %v575_v0  ;;  %v118_v16 = vld [vmem:[%s853_s3 + $0x10] sm:$0xff]  ;;  %v117_v17 = vld [vmem:[%s853_s3 + $0x8] sm:$0xff]  ;;  %v116_v18 = vld [vmem:[%s853_s3] sm:$0xff] }
   0x7   :  { %471 = vmatpush3.msra.mxu1 %v129_v5  ;;  %v225_v19 = vld [vmem:[%s854_s5 + $0x78] sm:$0xff]  ;;  %v224_v20 = vld [vmem:[%s854_s5 + $0x70] sm:$0xff]  ;;  %v223_v21 = vld [vmem:[%s854_s5 + $0x68] sm:$0xff] }
   0x8   :  { %472 = vmatprep.subr.mxu1 %v575_v0  ;;  %502 = vmatpush3.msra.mxu0 %v225_v19  ;;  %v222_v22 = vld [vmem:[%s854_s5 + $0x60] sm:$0xff]  ;;  %v221_v23 = vld [vmem:[%s854_s5 + $0x58] sm:$0xff]  ;;  %v220_v24 = vld [vmem:[%s854_s5 + $0x50] sm:$0xff] }
   0x9   :  { %473 = vmatpush3.msra.mxu1 %v128_v6  ;;  %503 = vmatprep.subr.mxu0 %v575_v0  ;;  %v219_v25 = vld [vmem:[%s854_s5 + $0x48] sm:$0xff]  ;;  %v218_v26 = vld [vmem:[%s854_s5 + $0x40] sm:$0xff]  ;;  %v217_v27 = vld [vmem:[%s854_s5 + $0x38] sm:$0xff] }
   0xa   :  { %474 = vmatprep.subr.mxu1 %v575_v0  ;;  %504 = vmatpush3.msra.mxu0 %v224_v20  ;;  %v216_v28 = vld [vmem:[%s854_s5 + $0x30] sm:$0xff]  ;;  %v215_v29 = vld [vmem:[%s854_s5 + $0x28] sm:$0xff]  ;;  %v214_v30 = vld [vmem:[%s854_s5 + $0x20] sm:$0xff] }
   0xb   :  { %475 = vmatpush3.msra.mxu1 %v127_v7  ;;  %505 = vmatprep.subr.mxu0 %v575_v0  ;;  %v213_v31 = vld [vmem:[%s854_s5 + $0x18] sm:$0xff]  ;;  %v403_v32 = vld [vmem:[%s855_s2] ss:$0 sm:$0xff]  ;;  %v212_v37 = vld [vmem:[%s854_s5 + $0x10] sm:$0xff] }
   0xc   :  { %476 = vmatprep.subr.mxu1 %v575_v0  ;;  %506 = vmatpush3.msra.mxu0 %v223_v21  ;;  %v211_v38 = vld [vmem:[%s854_s5 + $0x8] sm:$0xff]  ;;  %v210_v39 = vld [vmem:[%s854_s5] sm:$0xff]  ;;  %v319_v40 = vld [vmem:[%s856_s7 + $0x78] sm:$0xff] }
   0xd   :  { %477 = vmatpush3.msra.mxu1 %v126_v8  ;;  %507 = vmatprep.subr.mxu0 %v575_v0  ;;  %v318_v41 = vld [vmem:[%s856_s7 + $0x70] sm:$0xff]  ;;  %v317_v42 = vld [vmem:[%s856_s7 + $0x68] sm:$0xff]  ;;  %v316_v43 = vld [vmem:[%s856_s7 + $0x60] sm:$0xff] }
   0xe   :  { %478 = vmatprep.subr.mxu1 %v575_v0  ;;  %508 = vmatpush3.msra.mxu0 %v222_v22  ;;  %v315_v44 = vld [vmem:[%s856_s7 + $0x58] sm:$0xff]  ;;  %v314_v45 = vld [vmem:[%s856_s7 + $0x50] sm:$0xff]  ;;  %v313_v46 = vld [vmem:[%s856_s7 + $0x48] sm:$0xff] }
   0xf   :  { %479 = vmatpush3.msra.mxu1 %v125_v9  ;;  %509 = vmatprep.subr.mxu0 %v575_v0  ;;  %v312_v47 = vld [vmem:[%s856_s7 + $0x40] sm:$0xff]  ;;  %v311_v48 = vld [vmem:[%s856_s7 + $0x38] sm:$0xff]  ;;  %v310_v49 = vld [vmem:[%s856_s7 + $0x30] sm:$0xff] }
  0x10   :  { %480 = vmatprep.subr.mxu1 %v575_v0  ;;  %510 = vmatpush3.msra.mxu0 %v221_v23  ;;  %v309_v50 = vld [vmem:[%s856_s7 + $0x28] sm:$0xff]  ;;  %v308_v51 = vld [vmem:[%s856_s7 + $0x20] sm:$0xff]  ;;  %v307_v52 = vld [vmem:[%s856_s7 + $0x18] sm:$0xff] }
  0x11   :  { %481 = vmatpush3.msra.mxu1 %v124_v10  ;;  %511 = vmatprep.subr.mxu0 %v575_v0  ;;  %v405_v53 = vld [vmem:[%s857_s4] ss:$0 sm:$0xff]  ;;  %v306_v58 = vld [vmem:[%s856_s7 + $0x10] sm:$0xff]  ;;  %v305_v59 = vld [vmem:[%s856_s7 + $0x8] sm:$0xff] }
  0x12   :  { %482 = vmatprep.subr.mxu1 %v575_v0  ;;  %512 = vmatpush3.msra.mxu0 %v220_v24  ;;  %v304_v60 = vld [vmem:[%s856_s7] sm:$0xff] }
  0x13   :  { %483 = vmatpush3.msra.mxu1 %v123_v11  ;;  %513 = vmatprep.subr.mxu0 %v575_v0  ;;  %v406_v61 = vld [vmem:[%s858_s6] ss:$0 sm:$0xff] }
  0x14   :  { %484 = vmatprep.subr.mxu1 %v575_v0  ;;  %514 = vmatpush3.msra.mxu0 %v219_v25  ;;  %v407_v3 = vld [vmem:[%s859_s8] ss:$0 sm:$0xff] }
  0x15   :  { %485 = vmatpush3.msra.mxu1 %v122_v12  ;;  %515 = vmatprep.subr.mxu0 %v575_v0 }
  0x16   :  { %486 = vmatprep.subr.mxu1 %v575_v0  ;;  %516 = vmatpush3.msra.mxu0 %v218_v26 }
  0x17   :  { %487 = vmatpush3.msra.mxu1 %v121_v13  ;;  %517 = vmatprep.subr.mxu0 %v575_v0 }
  0x18   :  { %488 = vmatprep.subr.mxu1 %v575_v0  ;;  %518 = vmatpush3.msra.mxu0 %v217_v27 }
  0x19   :  { %489 = vmatpush3.msra.mxu1 %v120_v14  ;;  %519 = vmatprep.subr.mxu0 %v575_v0 }
  0x1a   :  { %490 = vmatprep.subr.mxu1 %v575_v0  ;;  %520 = vmatpush3.msra.mxu0 %v216_v28 }
  0x1b   :  { %491 = vmatpush3.msra.mxu1 %v119_v15  ;;  %521 = vmatprep.subr.mxu0 %v575_v0 }
  0x1c   :  { %492 = vmatprep.subr.mxu1 %v575_v0  ;;  %522 = vmatpush3.msra.mxu0 %v215_v29 }
  0x1d   :  { %493 = vmatpush3.msra.mxu1 %v118_v16  ;;  %523 = vmatprep.subr.mxu0 %v575_v0 }
  0x1e   :  { %494 = vmatprep.subr.mxu1 %v575_v0  ;;  %524 = vmatpush3.msra.mxu0 %v214_v30 }
  0x1f   :  { %495 = vmatpush3.msra.mxu1 %v117_v17  ;;  %525 = vmatprep.subr.mxu0 %v575_v0 }
  0x20   :  { %496 = vmatprep.subr.mxu1 %v575_v0  ;;  %526 = vmatpush3.msra.mxu0 %v213_v31 }
  0x21   :  { %497 = vmatpush3.msra.mxu1 %v116_v18  ;;  %527 = vmatprep.subr.mxu0 %v575_v0 }
  0x22   :  { %536 = vmatprep.subr.mxu1 %v575_v0  ;;  %528 = vmatpush3.msra.mxu0 %v212_v37 }
  0x23   :  { %529 = vmatprep.subr.mxu0 %v575_v0 }
  0x24   :  { %530 = vmatpush3.msra.mxu0 %v211_v38 }
  0x25   :  { %531 = vmatprep.subr.mxu0 %v575_v0 }
  0x26   :  { %532 = vmatpush3.msra.mxu0 %v210_v39 }
  0xc3   :  { %v111_v33 = vpop.f32.mrf.mxu0 }
  0xc4   :  { %v112_v34 = vadd.f32 %v403_v32, %v111_v33 }
  0xc5   :  { %v465_v35 = vpop.f32.mrf.mxu0 }
  0xc6   :  { %v115_v36 = vmax.f32 %v112_v34, 0.0 }
  0xc8   :  { %499 = vmatmul.mubr.f32.vlgmr.msra.gmra.mxu1 %v115_v36 }
  0xc9   :  { %568 = vmatprep.mubr.msk.f32.mxu1 %vm576_vm1, %v575_v0  ;;  %537 = vmatpush3.msra.mxu1 %v319_v40 }
  0xca   :  { %538 = vmatprep.subr.mxu1 %v575_v0 }
  0xcb   :  { %539 = vmatpush3.msra.mxu1 %v318_v41 }
  0xcc   :  { %540 = vmatprep.subr.mxu1 %v575_v0 }
  0xcd   :  { %541 = vmatpush3.msra.mxu1 %v317_v42 }
  0xce   :  { %542 = vmatprep.subr.mxu1 %v575_v0 }
  0xcf   :  { %543 = vmatpush3.msra.mxu1 %v316_v43 }
  0xd0   :  { %544 = vmatprep.subr.mxu1 %v575_v0 }
  0xd1   :  { %545 = vmatpush3.msra.mxu1 %v315_v44 }
  0xd2   :  { %546 = vmatprep.subr.mxu1 %v575_v0 }
  0xd3   :  { %547 = vmatpush3.msra.mxu1 %v314_v45 }
  0xd4   :  { %548 = vmatprep.subr.mxu1 %v575_v0 }
  0xd5   :  { %549 = vmatpush3.msra.mxu1 %v313_v46 }
  0xd6   :  { %550 = vmatprep.subr.mxu1 %v575_v0 }
  0xd7   :  { %551 = vmatpush3.msra.mxu1 %v312_v47 }
  0xd8   :  { %552 = vmatprep.subr.mxu1 %v575_v0 }
  0xd9   :  { %553 = vmatpush3.msra.mxu1 %v311_v48 }
  0xda   :  { %554 = vmatprep.subr.mxu1 %v575_v0 }
  0xdb   :  { %555 = vmatpush3.msra.mxu1 %v310_v49 }
  0xdc   :  { %556 = vmatprep.subr.mxu1 %v575_v0 }
  0xdd   :  { %557 = vmatpush3.msra.mxu1 %v309_v50 }
  0xde   :  { %558 = vmatprep.subr.mxu1 %v575_v0 }
  0xdf   :  { %559 = vmatpush3.msra.mxu1 %v308_v51 }
  0xe0   :  { %560 = vmatprep.subr.mxu1 %v575_v0 }
  0xe1   :  { %561 = vmatpush3.msra.mxu1 %v307_v52 }
  0xe2   :  { %562 = vmatprep.subr.mxu1 %v575_v0 }
  0xe3   :  { %563 = vmatpush3.msra.mxu1 %v306_v58 }
  0xe4   :  { %564 = vmatprep.subr.mxu1 %v575_v0 }
  0xe5   :  { %565 = vmatpush3.msra.mxu1 %v305_v59 }
  0xe6   :  { %566 = vmatprep.subr.mxu1 %v575_v0 }
  0xe7   :  { %567 = vmatpush3.msra.mxu1 %v304_v60 }
 0x188   :  { %v205_v54 = vpop.f32.mrf.mxu1 }
 0x189   :  { %v206_v55 = vadd.f32 %v405_v53, %v205_v54 }
 0x18a   :  { %v500_v56 = vpop.f32.mrf.mxu1 }
 0x18b   :  { %v209_v57 = vmax.f32 %v206_v55, 0.0 }
 0x18d   :  { %534 = vmatmul.mubr.f32.vlgmr.msra.gmra.mxu0 %v209_v57 }
 0x24d   :  { %v299_v62 = vpop.f32.mrf.mxu0 }
 0x24e   :  { %v300_v63 = vadd.f32 %v406_v61, %v299_v62 }
 0x24f   :  { %v535_v1 = vpop.f32.mrf.mxu0 }
 0x250   :  { %v303_v2 = vmax.f32 %v300_v63, 0.0 }
 0x252   :  { %569 = vmatmul.mubr.f32.vlgmr.msra.gmra.mxu1 %v303_v2 }
 0x312   :  { %v393_v4 = vpop.f32.mrf.mxu1 }
 0x313   :  { %v394_v0 = vadd.f32 %v407_v3, %v393_v4 }
 0x314   :  { %v570_v5 = vpop.f32.mrf.mxu1 }
 0x315   :  { %573 = vtanh.f32 %v394_v0 }
 0x322   :  { %v574_v6 = vpop.eup %573 }
 0x323   :  { %398 = vst.msk [vmem:[%s860_s9] sm:$0xff] %vm41_vm0, %v574_v6 }

</bundles_post_ra>
